<compile_context>
chip_gen: v6e
topology: v6e:2x2x1
jax: 0.10.0
libtpu: 0.0.40
codegen_flags: <defaults>
</compile_context>

<pallas_src>
from functools import partial

import jax
import jax.numpy as jnp
from jax.experimental import pallas as pl
from jax.experimental.pallas import tpu as pltpu


# ------------------------------ fused kernel ------------------------------- #

def _bottleneck_kernel(x_ref, w1_ref, b1_ref, w2_ref, b2_ref, w3_ref, b3_ref,
                       cmask_ref, rmask_ref, o_ref, slab_ref,
                       *, H, W, K, stride):
    # x_ref    : (1, Cin, M)        bf16  one image, channels-first, M = H*W
    # w1_ref   : (Cmid, Cin)        bf16  BN1 scale folded
    # b1_ref   : (Cmid, 1)          f32
    # w2_ref   : (K, Cmid, Kc_pad)  bf16  BN2 folded; [kh, co, kw*Cmid + ci], zero-padded
    # b2_ref   : (Cmid, 1)          f32
    # w3_ref   : (Cout, Cmid)       bf16  BN3 scale folded
    # b3_ref   : (Cout, 1)          f32
    # cmask_ref: (K, M)             f32   column-validity mask per kw tap
    # rmask_ref: (K, M)             f32   row-validity   mask per kh tap
    # o_ref    : (1, Cout, Mo)      f32   channels-first, lane-dense last dim
    # slab_ref : (Kc_pad, M)        bf16  VMEM scratch: kw-folded im2col slab
    M = H * W
    p = K // 2
    Cmid = w1_ref.shape[0]
    Kc = K * Cmid
    Kc_pad = slab_ref.shape[0]

    # ---------------- stage 1: 1x1 conv + BN + ReLU -------------------------
    x = x_ref[0]                                                    # (Cin, M) bf16
    y1 = jnp.dot(w1_ref[...], x, preferred_element_type=jnp.float32)
    y1 = jnp.maximum(y1 + b1_ref[...], 0.0)                         # (Cmid, M) f32

    # ---------------- stage 2: KxK conv + BN + ReLU (stride-1, 'same') ------
    # slab[kw*Cmid + ci, i*W + j] = y1[ci, i*W + (j + kw - p)], 0 outside the row.
    if Kc_pad > Kc:
        # zero the contraction-padding rows (scratch is not auto-initialized;
        # must be done every step because the grid may be split across cores)
        slab_ref[pl.ds(Kc, Kc_pad - Kc), :] = jnp.zeros(
            (Kc_pad - Kc, M), jnp.bfloat16)
    for kw in range(K):
        dw = kw - p
        if dw == 0:
            v = y1
        else:
            v = pltpu.roll(y1, shift=(-dw) % M, axis=1)             # lane roll (XLU)
            v = v * cmask_ref[pl.ds(kw, 1), :]                      # zero wrapped cols
        slab_ref[pl.ds(kw * Cmid, Cmid), :] = v.astype(jnp.bfloat16)

    acc = jnp.zeros((Cmid, M), jnp.float32)
    for kh in range(K):
        dh = kh - p
        # contraction = Kc_pad (128): kw is folded into the matmul.
        part = jnp.dot(w2_ref[kh], slab_ref[...],
                       preferred_element_type=jnp.float32)          # (Cmid, M) f32
        if dh != 0:
            # rolling the (small) matmul output == rolling the (big) slab input
            part = pltpu.roll(part, shift=(-dh * W) % M, axis=1)
            part = part * rmask_ref[pl.ds(kh, 1), :]                # zero wrapped rows
        acc = acc + part
    y2 = jnp.maximum(acc + b2_ref[...], 0.0)                        # (Cmid, M) f32

    if stride > 1:
        # TODO(synk): stride>1 computes the full stride-1 conv2 and subsamples;
        # a production kernel should select strided output columns while
        # building the slab (saves ~stride^2 MXU FLOPs and one relayout).
        y2 = y2.reshape(Cmid, H, W)[:, ::stride, ::stride].reshape(Cmid, -1)

    # ---------------- stage 3: 1x1 conv + BN + ReLU -------------------------
    out = jnp.dot(w3_ref[...], y2.astype(jnp.bfloat16),
                  preferred_element_type=jnp.float32)               # (Cout, Mo)
    out = jnp.maximum(out + b3_ref[...], 0.0)
    o_ref[0] = out.astype(o_ref.dtype)


# -------------------------------- wrapper ----------------------------------- #

def fold_bn(gamma, beta, mean, var, eps=1e-5):
    scale = gamma / jnp.sqrt(var + eps)
    bias = beta - mean * scale
    return scale, bias


@partial(jax.jit, static_argnames=("stride",))
def bottleneck_forward(x_nchw, params, stride=1):
    """Fused Bottleneck forward. x: (N, Cin, H, W); weights in PyTorch layouts."""
    N, Cin, H, W = x_nchw.shape
    w1, w2, w3 = params["w1"], params["w2"], params["w3"]   # (Cm,Ci,1,1),(Cm,Cm,K,K),(Co,Cm,1,1)
    Cmid = w1.shape[0]
    K = w2.shape[-1]
    Cout = w3.shape[0]
    p = K // 2
    M = H * W
    Ho = (H + 2 * p - K) // stride + 1
    Wo = (W + 2 * p - K) // stride + 1
    Mo = Ho * Wo
    Kc = K * Cmid
    Kc_pad = ((Kc + 127) // 128) * 128      # full-tile MXU contraction

    s1, b1 = fold_bn(*params["bn1"])
    s2, b2 = fold_bn(*params["bn2"])
    s3, b3 = fold_bn(*params["bn3"])

    # Fold BN scales into the conv weights (trace-time, weight-sized ops only).
    w1m = (w1[:, :, 0, 0] * s1[:, None]).astype(jnp.bfloat16)            # (Cmid, Cin)
    w2m = jnp.transpose(w2, (2, 0, 3, 1)) * s2[None, :, None, None]      # (Kh, Co, Kw, Ci)
    w2m = w2m.reshape(K, Cmid, Kc)                                       # [kh, co, kw*Cmid+ci]
    w2m = jnp.pad(w2m, ((0, 0), (0, 0), (0, Kc_pad - Kc))).astype(jnp.bfloat16)
    w3m = (w3[:, :, 0, 0] * s3[:, None]).astype(jnp.bfloat16)            # (Cout, Cmid)
    b1m = b1.reshape(Cmid, 1).astype(jnp.float32)
    b2m = b2.reshape(Cmid, 1).astype(jnp.float32)
    b3m = b3.reshape(Cout, 1).astype(jnp.float32)

    # Precomputed spatial boundary masks (tiny (K, M) constants, DMA'd once).
    m_idx = jnp.arange(M, dtype=jnp.int32)
    j_idx = m_idx % W
    i_idx = m_idx // W
    cmask = jnp.stack(
        [(j_idx + (kw - p) >= 0) & (j_idx + (kw - p) < W) for kw in range(K)]
    ).astype(jnp.float32)                                                 # (K, M)
    rmask = jnp.stack(
        [(i_idx + (kh - p) >= 0) & (i_idx + (kh - p) < H) for kh in range(K)]
    ).astype(jnp.float32)                                                 # (K, M)

    # bf16 MXU feed: cast once in the wrapper -> half the input HBM->VMEM DMA.
    x3 = x_nchw.astype(jnp.bfloat16).reshape(N, Cin, M)   # free reshape, no transpose

    out = pl.pallas_call(
        partial(_bottleneck_kernel, H=H, W=W, K=K, stride=stride),
        out_shape=jax.ShapeDtypeStruct((N, Cout, Mo), x_nchw.dtype),
        grid_spec=pltpu.PrefetchScalarGridSpec(
            num_scalar_prefetch=0,
            grid=(N,),
            in_specs=[
                pl.BlockSpec((1, Cin, M), lambda n: (n, 0, 0)),
                pl.BlockSpec((Cmid, Cin), lambda n: (0, 0)),
                pl.BlockSpec((Cmid, 1), lambda n: (0, 0)),
                pl.BlockSpec((K, Cmid, Kc_pad), lambda n: (0, 0, 0)),
                pl.BlockSpec((Cmid, 1), lambda n: (0, 0)),
                pl.BlockSpec((Cout, Cmid), lambda n: (0, 0)),
                pl.BlockSpec((Cout, 1), lambda n: (0, 0)),
                pl.BlockSpec((K, M), lambda n: (0, 0)),
                pl.BlockSpec((K, M), lambda n: (0, 0)),
            ],
            out_specs=pl.BlockSpec((1, Cout, Mo), lambda n: (n, 0, 0)),
            scratch_shapes=[pltpu.VMEM((Kc_pad, M), jnp.bfloat16)],
        ),
        compiler_params=pltpu.CompilerParams(
            dimension_semantics=("parallel",),
            vmem_limit_bytes=32 * 1024 * 1024,
        ),
    )(x3, w1m, b1m, w2m, b2m, w3m, b3m, cmask, rmask)

    return out.reshape(N, Cout, Ho, Wo)


# ----------------------------- pure-JAX reference --------------------------- #

def _reference_forward(x, params, stride=1, eps=1e-5):
    def bn(y, gamma, beta, mean, var):
        inv = gamma / jnp.sqrt(var + eps)
        return (y - mean[None, :, None, None]) * inv[None, :, None, None] \
            + beta[None, :, None, None]

    dn = ("NCHW", "OIHW", "NCHW")
    hp = jax.lax.Precision.HIGHEST
    K = params["w2"].shape[-1]
    p = K // 2
    y = jax.lax.conv_general_dilated(x, params["w1"], (1, 1), "VALID",
                                     dimension_numbers=dn, precision=hp)
    y = jax.nn.relu(bn(y, *params["bn1"]))
    y = jax.lax.conv_general_dilated(y, params["w2"], (stride, stride),
                                     [(p, p), (p, p)],
                                     dimension_numbers=dn, precision=hp)
    y = jax.nn.relu(bn(y, *params["bn2"]))
    y = jax.lax.conv_general_dilated(y, params["w3"], (1, 1), "VALID",
                                     dimension_numbers=dn, precision=hp)
    y = jax.nn.relu(bn(y, *params["bn3"]))
    return y


# ---------------------------------- main ------------------------------------ #

if __name__ == "__main__":
    key = jax.random.PRNGKey(0)
    keys = jax.random.split(key, 8)

    # Module hyper-parameters (small, consistent with the PyTorch module)
    N, Cin, H, W = 2, 8, 16, 16
    Cmid = 16                 # out_channels
    K = 7                     # mid_kernel_size (PyTorch default)
    stride = 1
    expansion = 4
    Cout = Cmid * expansion

    x = jax.random.normal(keys[0], (N, Cin, H, W), dtype=jnp.float32)

    # Conv weights in PyTorch layouts (OIHW):
    w1 = jax.random.normal(keys[1], (Cmid, Cin, 1, 1), jnp.float32) * 0.1
    w2 = jax.random.normal(keys[2], (Cmid, Cmid, K, K), jnp.float32) * 0.05
    w3 = jax.random.normal(keys[3], (Cout, Cmid, 1, 1), jnp.float32) * 0.1

    def bn_params(k, c):
        ks = jax.random.split(k, 4)
        gamma = jax.random.uniform(ks[0], (c,), minval=0.5, maxval=1.5)
        beta = jax.random.normal(ks[1], (c,)) * 0.1
        mean = jax.random.normal(ks[2], (c,)) * 0.1
        var = jax.random.uniform(ks[3], (c,), minval=0.5, maxval=1.5)
        return (gamma, beta, mean, var)

    params = dict(
        w1=w1, w2=w2, w3=w3,
        bn1=bn_params(keys[4], Cmid),
        bn2=bn_params(keys[5], Cmid),
        bn3=bn_params(keys[6], Cout),
    )

    out = bottleneck_forward(x, params, stride=stride)
    out = jax.block_until_ready(out)
    assert out.shape == (N, Cout, H, W), out.shape
    assert bool(jnp.all(out >= 0.0))          # ReLU output

    # Numerical check vs. a pure-JAX (f32) reference; tolerance accounts for the
    # bf16 MXU feed inside the kernel.
    ref = _reference_forward(x, params, stride=stride)
    err = float(jnp.max(jnp.abs(out - ref)))
    assert err < 1e-1, f"max abs err {err}"

    print("KERNEL_OK")
</pallas_src>

<mosaic_0001>
module attributes {stable_mosaic.version = 11 : i64} {
  func.func @_bottleneck_kernel(%arg0: i32, %arg1: memref<1x8x256xbf16, #tpu.memory_space<vmem>>, %arg2: memref<16x8xbf16, #tpu.memory_space<vmem>>, %arg3: memref<16x1xf32, #tpu.memory_space<vmem>>, %arg4: memref<7x16x128xbf16, #tpu.memory_space<vmem>>, %arg5: memref<16x1xf32, #tpu.memory_space<vmem>>, %arg6: memref<64x16xbf16, #tpu.memory_space<vmem>>, %arg7: memref<64x1xf32, #tpu.memory_space<vmem>>, %arg8: memref<7x256xf32, #tpu.memory_space<vmem>>, %arg9: memref<7x256xf32, #tpu.memory_space<vmem>>, %arg10: memref<1x64x256xf32, #tpu.memory_space<vmem>>, %arg11: memref<128x256xbf16, #tpu.memory_space<vmem>>) attributes {dimension_semantics = [#tpu.dimension_semantics<parallel>], iteration_bounds = array<i64: 2>, scalar_prefetch = 0 : i64, scratch_operands = 1 : i64, tpu.core_type = #tpu.core_type<tc>, window_params = [{transform_indices = @transform_0, window_bounds = array<i64: 1, 8, 256>}, {pipeline_mode = #tpu.pipeline_mode<synchronous>, transform_indices = @transform_1, window_bounds = array<i64: 16, 8>}, {pipeline_mode = #tpu.pipeline_mode<synchronous>, transform_indices = @transform_2, window_bounds = array<i64: 16, 1>}, {pipeline_mode = #tpu.pipeline_mode<synchronous>, transform_indices = @transform_3, window_bounds = array<i64: 7, 16, 128>}, {pipeline_mode = #tpu.pipeline_mode<synchronous>, transform_indices = @transform_4, window_bounds = array<i64: 16, 1>}, {pipeline_mode = #tpu.pipeline_mode<synchronous>, transform_indices = @transform_5, window_bounds = array<i64: 64, 16>}, {pipeline_mode = #tpu.pipeline_mode<synchronous>, transform_indices = @transform_6, window_bounds = array<i64: 64, 1>}, {pipeline_mode = #tpu.pipeline_mode<synchronous>, transform_indices = @transform_7, window_bounds = array<i64: 7, 256>}, {pipeline_mode = #tpu.pipeline_mode<synchronous>, transform_indices = @transform_8, window_bounds = array<i64: 7, 256>}, {transform_indices = @transform_9, window_bounds = array<i64: 1, 64, 256>}]} {
    %c0 = arith.constant 0 : index
    %c0_0 = arith.constant 0 : index
    %c0_1 = arith.constant 0 : index
    %0 = vector.load %arg1[%c0, %c0_0, %c0_1] : memref<1x8x256xbf16, #tpu.memory_space<vmem>>, vector<1x8x256xbf16>
    %1 = vector.shape_cast %0 : vector<1x8x256xbf16> to vector<8x256xbf16>
    %c0_2 = arith.constant 0 : index
    %c0_3 = arith.constant 0 : index
    %2 = vector.load %arg2[%c0_2, %c0_3] : memref<16x8xbf16, #tpu.memory_space<vmem>>, vector<16x8xbf16>
    %cst = arith.constant dense<0.000000e+00> : vector<16x256xf32>
    %3 = tpu.matmul %2, %1, %cst {dimension_numbers = #tpu.dot_dimension_numbers<[1], [0], [0], [1], [0, 0, 1, 1], [], []>} : vector<16x8xbf16>, vector<8x256xbf16>, vector<16x256xf32> -> vector<16x256xf32>
    %c0_4 = arith.constant 0 : index
    %c0_5 = arith.constant 0 : index
    %4 = vector.load %arg3[%c0_4, %c0_5] : memref<16x1xf32, #tpu.memory_space<vmem>>, vector<16x1xf32>
    %5 = vector.broadcast %4 : vector<16x1xf32> to vector<16x256xf32>
    %6 = arith.addf %3, %5 : vector<16x256xf32>
    %cst_6 = arith.constant 0.000000e+00 : f32
    %7 = vector.broadcast %cst_6 : f32 to vector<16x256xf32>
    %8 = arith.maximumf %6, %7 : vector<16x256xf32>
    %cst_7 = arith.constant 0.000000e+00 : bf16
    %9 = vector.broadcast %cst_7 : bf16 to vector<16x256xbf16>
    %c112 = arith.constant 112 : index
    %c0_8 = arith.constant 0 : index
    %10 = vector.load %arg11[%c112, %c0_8] : memref<128x256xbf16, #tpu.memory_space<vmem>>, vector<16x256xbf16>
    tpu.vector_store %arg11[%c112, %c0_8], %9 {strides = array<i32>} : memref<128x256xbf16, #tpu.memory_space<vmem>>, vector<16x256xbf16>,
    %c3_i32 = arith.constant 3 : i32
    %11 = tpu.dynamic_rotate %8 by %c3_i32 dim 1 : vector<16x256xf32>, i32 -> vector<16x256xf32>
    %c0_9 = arith.constant 0 : index
    %c0_10 = arith.constant 0 : index
    %12 = vector.load %arg8[%c0_9, %c0_10] : memref<7x256xf32, #tpu.memory_space<vmem>>, vector<1x256xf32>
    %13 = vector.broadcast %12 : vector<1x256xf32> to vector<16x256xf32>
    %14 = arith.mulf %11, %13 : vector<16x256xf32>
    %15 = arith.truncf %14 : vector<16x256xf32> to vector<16x256xbf16>
    %c0_11 = arith.constant 0 : index
    %c0_12 = arith.constant 0 : index
    %16 = vector.load %arg11[%c0_11, %c0_12] : memref<128x256xbf16, #tpu.memory_space<vmem>>, vector<16x256xbf16>
    tpu.vector_store %arg11[%c0_11, %c0_12], %15 {strides = array<i32>} : memref<128x256xbf16, #tpu.memory_space<vmem>>, vector<16x256xbf16>,
    %c2_i32 = arith.constant 2 : i32
    %17 = tpu.dynamic_rotate %8 by %c2_i32 dim 1 : vector<16x256xf32>, i32 -> vector<16x256xf32>
    %c1 = arith.constant 1 : index
    %c0_13 = arith.constant 0 : index
    %18 = vector.load %arg8[%c1, %c0_13] : memref<7x256xf32, #tpu.memory_space<vmem>>, vector<1x256xf32>
    %19 = vector.broadcast %18 : vector<1x256xf32> to vector<16x256xf32>
    %20 = arith.mulf %17, %19 : vector<16x256xf32>
    %21 = arith.truncf %20 : vector<16x256xf32> to vector<16x256xbf16>
    %c16 = arith.constant 16 : index
    %c0_14 = arith.constant 0 : index
    %22 = vector.load %arg11[%c16, %c0_14] : memref<128x256xbf16, #tpu.memory_space<vmem>>, vector<16x256xbf16>
    tpu.vector_store %arg11[%c16, %c0_14], %21 {strides = array<i32>} : memref<128x256xbf16, #tpu.memory_space<vmem>>, vector<16x256xbf16>,
    %c1_i32 = arith.constant 1 : i32
    %23 = tpu.dynamic_rotate %8 by %c1_i32 dim 1 : vector<16x256xf32>, i32 -> vector<16x256xf32>
    %c2 = arith.constant 2 : index
    %c0_15 = arith.constant 0 : index
    %24 = vector.load %arg8[%c2, %c0_15] : memref<7x256xf32, #tpu.memory_space<vmem>>, vector<1x256xf32>
    %25 = vector.broadcast %24 : vector<1x256xf32> to vector<16x256xf32>
    %26 = arith.mulf %23, %25 : vector<16x256xf32>
    %27 = arith.truncf %26 : vector<16x256xf32> to vector<16x256xbf16>
    %c32 = arith.constant 32 : index
    %c0_16 = arith.constant 0 : index
    %28 = vector.load %arg11[%c32, %c0_16] : memref<128x256xbf16, #tpu.memory_space<vmem>>, vector<16x256xbf16>
    tpu.vector_store %arg11[%c32, %c0_16], %27 {strides = array<i32>} : memref<128x256xbf16, #tpu.memory_space<vmem>>, vector<16x256xbf16>,
    %29 = arith.truncf %8 : vector<16x256xf32> to vector<16x256xbf16>
    %c48 = arith.constant 48 : index
    %c0_17 = arith.constant 0 : index
    %30 = vector.load %arg11[%c48, %c0_17] : memref<128x256xbf16, #tpu.memory_space<vmem>>, vector<16x256xbf16>
    tpu.vector_store %arg11[%c48, %c0_17], %29 {strides = array<i32>} : memref<128x256xbf16, #tpu.memory_space<vmem>>, vector<16x256xbf16>,
    %c255_i32 = arith.constant 255 : i32
    %31 = tpu.dynamic_rotate %8 by %c255_i32 dim 1 : vector<16x256xf32>, i32 -> vector<16x256xf32>
    %c4 = arith.constant 4 : index
    %c0_18 = arith.constant 0 : index
    %32 = vector.load %arg8[%c4, %c0_18] : memref<7x256xf32, #tpu.memory_space<vmem>>, vector<1x256xf32>
    %33 = vector.broadcast %32 : vector<1x256xf32> to vector<16x256xf32>
    %34 = arith.mulf %31, %33 : vector<16x256xf32>
    %35 = arith.truncf %34 : vector<16x256xf32> to vector<16x256xbf16>
    %c64 = arith.constant 64 : index
    %c0_19 = arith.constant 0 : index
    %36 = vector.load %arg11[%c64, %c0_19] : memref<128x256xbf16, #tpu.memory_space<vmem>>, vector<16x256xbf16>
    tpu.vector_store %arg11[%c64, %c0_19], %35 {strides = array<i32>} : memref<128x256xbf16, #tpu.memory_space<vmem>>, vector<16x256xbf16>,
    %c254_i32 = arith.constant 254 : i32
    %37 = tpu.dynamic_rotate %8 by %c254_i32 dim 1 : vector<16x256xf32>, i32 -> vector<16x256xf32>
    %c5 = arith.constant 5 : index
    %c0_20 = arith.constant 0 : index
    %38 = vector.load %arg8[%c5, %c0_20] : memref<7x256xf32, #tpu.memory_space<vmem>>, vector<1x256xf32>
    %39 = vector.broadcast %38 : vector<1x256xf32> to vector<16x256xf32>
    %40 = arith.mulf %37, %39 : vector<16x256xf32>
    %41 = arith.truncf %40 : vector<16x256xf32> to vector<16x256xbf16>
    %c80 = arith.constant 80 : index
    %c0_21 = arith.constant 0 : index
    %42 = vector.load %arg11[%c80, %c0_21] : memref<128x256xbf16, #tpu.memory_space<vmem>>, vector<16x256xbf16>
    tpu.vector_store %arg11[%c80, %c0_21], %41 {strides = array<i32>} : memref<128x256xbf16, #tpu.memory_space<vmem>>, vector<16x256xbf16>,
    %c253_i32 = arith.constant 253 : i32
    %43 = tpu.dynamic_rotate %8 by %c253_i32 dim 1 : vector<16x256xf32>, i32 -> vector<16x256xf32>
    %c6 = arith.constant 6 : index
    %c0_22 = arith.constant 0 : index
    %44 = vector.load %arg8[%c6, %c0_22] : memref<7x256xf32, #tpu.memory_space<vmem>>, vector<1x256xf32>
    %45 = vector.broadcast %44 : vector<1x256xf32> to vector<16x256xf32>
    %46 = arith.mulf %43, %45 : vector<16x256xf32>
    %47 = arith.truncf %46 : vector<16x256xf32> to vector<16x256xbf16>
    %c96 = arith.constant 96 : index
    %c0_23 = arith.constant 0 : index
    %48 = vector.load %arg11[%c96, %c0_23] : memref<128x256xbf16, #tpu.memory_space<vmem>>, vector<16x256xbf16>
    tpu.vector_store %arg11[%c96, %c0_23], %47 {strides = array<i32>} : memref<128x256xbf16, #tpu.memory_space<vmem>>, vector<16x256xbf16>,
    %cst_24 = arith.constant 0.000000e+00 : f32
    %49 = vector.broadcast %cst_24 : f32 to vector<16x256xf32>
    %c0_25 = arith.constant 0 : index
    %c0_26 = arith.constant 0 : index
    %c0_27 = arith.constant 0 : index
    %50 = vector.load %arg4[%c0_25, %c0_26, %c0_27] : memref<7x16x128xbf16, #tpu.memory_space<vmem>>, vector<1x16x128xbf16>
    %51 = vector.shape_cast %50 : vector<1x16x128xbf16> to vector<16x128xbf16>
    %c0_28 = arith.constant 0 : index
    %c0_29 = arith.constant 0 : index
    %52 = vector.load %arg11[%c0_28, %c0_29] : memref<128x256xbf16, #tpu.memory_space<vmem>>, vector<128x256xbf16>
    %cst_30 = arith.constant dense<0.000000e+00> : vector<16x256xf32>
    %53 = tpu.matmul %51, %52, %cst_30 {dimension_numbers = #tpu.dot_dimension_numbers<[1], [0], [0], [1], [0, 0, 1, 1], [], []>} : vector<16x128xbf16>, vector<128x256xbf16>, vector<16x256xf32> -> vector<16x256xf32>
    %c48_i32 = arith.constant 48 : i32
    %54 = tpu.dynamic_rotate %53 by %c48_i32 dim 1 : vector<16x256xf32>, i32 -> vector<16x256xf32>
    %c0_31 = arith.constant 0 : index
    %c0_32 = arith.constant 0 : index
    %55 = vector.load %arg9[%c0_31, %c0_32] : memref<7x256xf32, #tpu.memory_space<vmem>>, vector<1x256xf32>
    %56 = vector.broadcast %55 : vector<1x256xf32> to vector<16x256xf32>
    %57 = arith.mulf %54, %56 : vector<16x256xf32>
    %58 = arith.addf %49, %57 : vector<16x256xf32>
    %c1_33 = arith.constant 1 : index
    %c0_34 = arith.constant 0 : index
    %c0_35 = arith.constant 0 : index
    %59 = vector.load %arg4[%c1_33, %c0_34, %c0_35] : memref<7x16x128xbf16, #tpu.memory_space<vmem>>, vector<1x16x128xbf16>
    %60 = vector.shape_cast %59 : vector<1x16x128xbf16> to vector<16x128xbf16>
    %c0_36 = arith.constant 0 : index
    %c0_37 = arith.constant 0 : index
    %61 = vector.load %arg11[%c0_36, %c0_37] : memref<128x256xbf16, #tpu.memory_space<vmem>>, vector<128x256xbf16>
    %cst_38 = arith.constant dense<0.000000e+00> : vector<16x256xf32>
    %62 = tpu.matmul %60, %61, %cst_38 {dimension_numbers = #tpu.dot_dimension_numbers<[1], [0], [0], [1], [0, 0, 1, 1], [], []>} : vector<16x128xbf16>, vector<128x256xbf16>, vector<16x256xf32> -> vector<16x256xf32>
    %c32_i32 = arith.constant 32 : i32
    %63 = tpu.dynamic_rotate %62 by %c32_i32 dim 1 : vector<16x256xf32>, i32 -> vector<16x256xf32>
    %c1_39 = arith.constant 1 : index
    %c0_40 = arith.constant 0 : index
    %64 = vector.load %arg9[%c1_39, %c0_40] : memref<7x256xf32, #tpu.memory_space<vmem>>, vector<1x256xf32>
    %65 = vector.broadcast %64 : vector<1x256xf32> to vector<16x256xf32>
    %66 = arith.mulf %63, %65 : vector<16x256xf32>
    %67 = arith.addf %58, %66 : vector<16x256xf32>
    %c2_41 = arith.constant 2 : index
    %c0_42 = arith.constant 0 : index
    %c0_43 = arith.constant 0 : index
    %68 = vector.load %arg4[%c2_41, %c0_42, %c0_43] : memref<7x16x128xbf16, #tpu.memory_space<vmem>>, vector<1x16x128xbf16>
    %69 = vector.shape_cast %68 : vector<1x16x128xbf16> to vector<16x128xbf16>
    %c0_44 = arith.constant 0 : index
    %c0_45 = arith.constant 0 : index
    %70 = vector.load %arg11[%c0_44, %c0_45] : memref<128x256xbf16, #tpu.memory_space<vmem>>, vector<128x256xbf16>
    %cst_46 = arith.constant dense<0.000000e+00> : vector<16x256xf32>
    %71 = tpu.matmul %69, %70, %cst_46 {dimension_numbers = #tpu.dot_dimension_numbers<[1], [0], [0], [1], [0, 0, 1, 1], [], []>} : vector<16x128xbf16>, vector<128x256xbf16>, vector<16x256xf32> -> vector<16x256xf32>
    %c16_i32 = arith.constant 16 : i32
    %72 = tpu.dynamic_rotate %71 by %c16_i32 dim 1 : vector<16x256xf32>, i32 -> vector<16x256xf32>
    %c2_47 = arith.constant 2 : index
    %c0_48 = arith.constant 0 : index
    %73 = vector.load %arg9[%c2_47, %c0_48] : memref<7x256xf32, #tpu.memory_space<vmem>>, vector<1x256xf32>
    %74 = vector.broadcast %73 : vector<1x256xf32> to vector<16x256xf32>
    %75 = arith.mulf %72, %74 : vector<16x256xf32>
    %76 = arith.addf %67, %75 : vector<16x256xf32>
    %c3 = arith.constant 3 : index
    %c0_49 = arith.constant 0 : index
    %c0_50 = arith.constant 0 : index
    %77 = vector.load %arg4[%c3, %c0_49, %c0_50] : memref<7x16x128xbf16, #tpu.memory_space<vmem>>, vector<1x16x128xbf16>
    %78 = vector.shape_cast %77 : vector<1x16x128xbf16> to vector<16x128xbf16>
    %c0_51 = arith.constant 0 : index
    %c0_52 = arith.constant 0 : index
    %79 = vector.load %arg11[%c0_51, %c0_52] : memref<128x256xbf16, #tpu.memory_space<vmem>>, vector<128x256xbf16>
    %cst_53 = arith.constant dense<0.000000e+00> : vector<16x256xf32>
    %80 = tpu.matmul %78, %79, %cst_53 {dimension_numbers = #tpu.dot_dimension_numbers<[1], [0], [0], [1], [0, 0, 1, 1], [], []>} : vector<16x128xbf16>, vector<128x256xbf16>, vector<16x256xf32> -> vector<16x256xf32>
    %81 = arith.addf %76, %80 : vector<16x256xf32>
    %c4_54 = arith.constant 4 : index
    %c0_55 = arith.constant 0 : index
    %c0_56 = arith.constant 0 : index
    %82 = vector.load %arg4[%c4_54, %c0_55, %c0_56] : memref<7x16x128xbf16, #tpu.memory_space<vmem>>, vector<1x16x128xbf16>
    %83 = vector.shape_cast %82 : vector<1x16x128xbf16> to vector<16x128xbf16>
    %c0_57 = arith.constant 0 : index
    %c0_58 = arith.constant 0 : index
    %84 = vector.load %arg11[%c0_57, %c0_58] : memref<128x256xbf16, #tpu.memory_space<vmem>>, vector<128x256xbf16>
    %cst_59 = arith.constant dense<0.000000e+00> : vector<16x256xf32>
    %85 = tpu.matmul %83, %84, %cst_59 {dimension_numbers = #tpu.dot_dimension_numbers<[1], [0], [0], [1], [0, 0, 1, 1], [], []>} : vector<16x128xbf16>, vector<128x256xbf16>, vector<16x256xf32> -> vector<16x256xf32>
    %c240_i32 = arith.constant 240 : i32
    %86 = tpu.dynamic_rotate %85 by %c240_i32 dim 1 : vector<16x256xf32>, i32 -> vector<16x256xf32>
    %c4_60 = arith.constant 4 : index
    %c0_61 = arith.constant 0 : index
    %87 = vector.load %arg9[%c4_60, %c0_61] : memref<7x256xf32, #tpu.memory_space<vmem>>, vector<1x256xf32>
    %88 = vector.broadcast %87 : vector<1x256xf32> to vector<16x256xf32>
    %89 = arith.mulf %86, %88 : vector<16x256xf32>
    %90 = arith.addf %81, %89 : vector<16x256xf32>
    %c5_62 = arith.constant 5 : index
    %c0_63 = arith.constant 0 : index
    %c0_64 = arith.constant 0 : index
    %91 = vector.load %arg4[%c5_62, %c0_63, %c0_64] : memref<7x16x128xbf16, #tpu.memory_space<vmem>>, vector<1x16x128xbf16>
    %92 = vector.shape_cast %91 : vector<1x16x128xbf16> to vector<16x128xbf16>
    %c0_65 = arith.constant 0 : index
    %c0_66 = arith.constant 0 : index
    %93 = vector.load %arg11[%c0_65, %c0_66] : memref<128x256xbf16, #tpu.memory_space<vmem>>, vector<128x256xbf16>
    %cst_67 = arith.constant dense<0.000000e+00> : vector<16x256xf32>
    %94 = tpu.matmul %92, %93, %cst_67 {dimension_numbers = #tpu.dot_dimension_numbers<[1], [0], [0], [1], [0, 0, 1, 1], [], []>} : vector<16x128xbf16>, vector<128x256xbf16>, vector<16x256xf32> -> vector<16x256xf32>
    %c224_i32 = arith.constant 224 : i32
    %95 = tpu.dynamic_rotate %94 by %c224_i32 dim 1 : vector<16x256xf32>, i32 -> vector<16x256xf32>
    %c5_68 = arith.constant 5 : index
    %c0_69 = arith.constant 0 : index
    %96 = vector.load %arg9[%c5_68, %c0_69] : memref<7x256xf32, #tpu.memory_space<vmem>>, vector<1x256xf32>
    %97 = vector.broadcast %96 : vector<1x256xf32> to vector<16x256xf32>
    %98 = arith.mulf %95, %97 : vector<16x256xf32>
    %99 = arith.addf %90, %98 : vector<16x256xf32>
    %c6_70 = arith.constant 6 : index
    %c0_71 = arith.constant 0 : index
    %c0_72 = arith.constant 0 : index
    %100 = vector.load %arg4[%c6_70, %c0_71, %c0_72] : memref<7x16x128xbf16, #tpu.memory_space<vmem>>, vector<1x16x128xbf16>
    %101 = vector.shape_cast %100 : vector<1x16x128xbf16> to vector<16x128xbf16>
    %c0_73 = arith.constant 0 : index
    %c0_74 = arith.constant 0 : index
    %102 = vector.load %arg11[%c0_73, %c0_74] : memref<128x256xbf16, #tpu.memory_space<vmem>>, vector<128x256xbf16>
    %cst_75 = arith.constant dense<0.000000e+00> : vector<16x256xf32>
    %103 = tpu.matmul %101, %102, %cst_75 {dimension_numbers = #tpu.dot_dimension_numbers<[1], [0], [0], [1], [0, 0, 1, 1], [], []>} : vector<16x128xbf16>, vector<128x256xbf16>, vector<16x256xf32> -> vector<16x256xf32>
    %c208_i32 = arith.constant 208 : i32
    %104 = tpu.dynamic_rotate %103 by %c208_i32 dim 1 : vector<16x256xf32>, i32 -> vector<16x256xf32>
    %c6_76 = arith.constant 6 : index
    %c0_77 = arith.constant 0 : index
    %105 = vector.load %arg9[%c6_76, %c0_77] : memref<7x256xf32, #tpu.memory_space<vmem>>, vector<1x256xf32>
    %106 = vector.broadcast %105 : vector<1x256xf32> to vector<16x256xf32>
    %107 = arith.mulf %104, %106 : vector<16x256xf32>
    %108 = arith.addf %99, %107 : vector<16x256xf32>
    %c0_78 = arith.constant 0 : index
    %c0_79 = arith.constant 0 : index
    %109 = vector.load %arg5[%c0_78, %c0_79] : memref<16x1xf32, #tpu.memory_space<vmem>>, vector<16x1xf32>
    %110 = vector.broadcast %109 : vector<16x1xf32> to vector<16x256xf32>
    %111 = arith.addf %108, %110 : vector<16x256xf32>
    %cst_80 = arith.constant 0.000000e+00 : f32
    %112 = vector.broadcast %cst_80 : f32 to vector<16x256xf32>
    %113 = arith.maximumf %111, %112 : vector<16x256xf32>
    %c0_81 = arith.constant 0 : index
    %c0_82 = arith.constant 0 : index
    %114 = vector.load %arg6[%c0_81, %c0_82] : memref<64x16xbf16, #tpu.memory_space<vmem>>, vector<64x16xbf16>
    %115 = arith.truncf %113 : vector<16x256xf32> to vector<16x256xbf16>
    %cst_83 = arith.constant dense<0.000000e+00> : vector<64x256xf32>
    %116 = tpu.matmul %114, %115, %cst_83 {dimension_numbers = #tpu.dot_dimension_numbers<[1], [0], [0], [1], [0, 0, 1, 1], [], []>} : vector<64x16xbf16>, vector<16x256xbf16>, vector<64x256xf32> -> vector<64x256xf32>
    %c0_84 = arith.constant 0 : index
    %c0_85 = arith.constant 0 : index
    %117 = vector.load %arg7[%c0_84, %c0_85] : memref<64x1xf32, #tpu.memory_space<vmem>>, vector<64x1xf32>
    %118 = vector.broadcast %117 : vector<64x1xf32> to vector<64x256xf32>
    %119 = arith.addf %116, %118 : vector<64x256xf32>
    %cst_86 = arith.constant 0.000000e+00 : f32
    %120 = vector.broadcast %cst_86 : f32 to vector<64x256xf32>
    %121 = arith.maximumf %119, %120 : vector<64x256xf32>
    %c0_87 = arith.constant 0 : index
    %c0_88 = arith.constant 0 : index
    %c0_89 = arith.constant 0 : index
    %122 = vector.load %arg10[%c0_87, %c0_88, %c0_89] : memref<1x64x256xf32, #tpu.memory_space<vmem>>, vector<1x64x256xf32>
    %123 = vector.shape_cast %122 : vector<1x64x256xf32> to vector<64x256xf32>
    %124 = vector.shape_cast %121 : vector<64x256xf32> to vector<1x64x256xf32>
    tpu.vector_store %arg10[%c0_87, %c0_88, %c0_89], %124 {strides = array<i32>} : memref<1x64x256xf32, #tpu.memory_space<vmem>>, vector<1x64x256xf32>,
    return
  }
  func.func @transform_0(%arg0: i32) -> (i32, i32, i32) {
    %c0_i32 = arith.constant 0 : i32
    %c0_i32_0 = arith.constant 0 : i32
    %c0_i32_1 = arith.constant 0 : i32
    return %arg0, %c0_i32, %c0_i32_0 : i32, i32, i32
  }
  func.func @transform_1(%arg0: i32) -> (i32, i32) {
    %c0_i32 = arith.constant 0 : i32
    %c0_i32_0 = arith.constant 0 : i32
    %c0_i32_1 = arith.constant 0 : i32
    return %c0_i32, %c0_i32_0 : i32, i32
  }
  func.func @transform_2(%arg0: i32) -> (i32, i32) {
    %c0_i32 = arith.constant 0 : i32
    %c0_i32_0 = arith.constant 0 : i32
    %c0_i32_1 = arith.constant 0 : i32
    return %c0_i32, %c0_i32_0 : i32, i32
  }
  func.func @transform_3(%arg0: i32) -> (i32, i32, i32) {
    %c0_i32 = arith.constant 0 : i32
    %c0_i32_0 = arith.constant 0 : i32
    %c0_i32_1 = arith.constant 0 : i32
    %c0_i32_2 = arith.constant 0 : i32
    return %c0_i32, %c0_i32_0, %c0_i32_1 : i32, i32, i32
  }
  func.func @transform_4(%arg0: i32) -> (i32, i32) {
    %c0_i32 = arith.constant 0 : i32
    %c0_i32_0 = arith.constant 0 : i32
    %c0_i32_1 = arith.constant 0 : i32
    return %c0_i32, %c0_i32_0 : i32, i32
  }
  func.func @transform_5(%arg0: i32) -> (i32, i32) {
    %c0_i32 = arith.constant 0 : i32
    %c0_i32_0 = arith.constant 0 : i32
    %c0_i32_1 = arith.constant 0 : i32
    return %c0_i32, %c0_i32_0 : i32, i32
  }
  func.func @transform_6(%arg0: i32) -> (i32, i32) {
    %c0_i32 = arith.constant 0 : i32
    %c0_i32_0 = arith.constant 0 : i32
    %c0_i32_1 = arith.constant 0 : i32
    return %c0_i32, %c0_i32_0 : i32, i32
  }
  func.func @transform_7(%arg0: i32) -> (i32, i32) {
    %c0_i32 = arith.constant 0 : i32
    %c0_i32_0 = arith.constant 0 : i32
    %c0_i32_1 = arith.constant 0 : i32
    return %c0_i32, %c0_i32_0 : i32, i32
  }
  func.func @transform_8(%arg0: i32) -> (i32, i32) {
    %c0_i32 = arith.constant 0 : i32
    %c0_i32_0 = arith.constant 0 : i32
    %c0_i32_1 = arith.constant 0 : i32
    return %c0_i32, %c0_i32_0 : i32, i32
  }
  func.func @transform_9(%arg0: i32) -> (i32, i32, i32) {
    %c0_i32 = arith.constant 0 : i32
    %c0_i32_0 = arith.constant 0 : i32
    %c0_i32_1 = arith.constant 0 : i32
    return %arg0, %c0_i32, %c0_i32_0 : i32, i32, i32
  }
}

</mosaic_0001>

<bundles_post_ra>
// kernel: bottleneck_forward.1
= control target key start
LH: loop header
LB: loop body
LE: loop exit
PB: predicated region body
PF: predicated region fallthrough
CT: control target
= control target key end

     0   :  { %s1856_s30 = smov 0   ;;  %s2351_s0 = inlined_call_operand.vmem [shape: bf16[2,8,256], index: 0, kind: input, shape index: {}]   ;;  %s2352_s1 = inlined_call_operand.vmem [shape: bf16[16,8], index: 1, kind: input, shape index: {}]   ;;  %s2353_s2 = inlined_call_operand.vmem [shape: f32[16,1], index: 2, kind: input, shape index: {}]   ;;  %s2354_s3 = inlined_call_operand.vmem [shape: bf16[7,16,128], index: 3, kind: input, shape index: {}]   ;;  %s2355_s4 = inlined_call_operand.vmem [shape: f32[16,1], index: 4, kind: input, shape index: {}]   ;;  %s2356_s5 = inlined_call_operand.vmem [shape: bf16[64,16], index: 5, kind: input, shape index: {}]   ;;  %s2357_s6 = inlined_call_operand.vmem [shape: f32[64,1], index: 6, kind: input, shape index: {}]   ;;  %s2358_s7 = inlined_call_operand.vmem [shape: f32[7,256], index: 7, kind: input, shape index: {}]   ;;  %s2359_s8 = inlined_call_operand.vmem [shape: f32[7,256], index: 8, kind: input, shape index: {}]   ;;  %s2360_s9 = inlined_call_operand.vmem [shape: f32[2,64,256], index: 9, kind: output, shape index: {}]  }
   0x1 LB: > { %s1635_s10 = sadd.s32 4294967295, %s1791_s30   ;;  %p1639_p0 = scmp.ge.s32.totalorder %s1791_s30, 1  ;;  %s1791_s30 = sphi %s1856_s30, %s19_s30  }
   0x2   : > { %p287_p1 = scmp.lt.s32.totalorder %s1791_s30, 3 }
   0x4   : > { %p288_p2 = pnand %p1639_p0, %p287_p1 }
   0x5   : > { %p323_p3 = scmp.lt.s32.totalorder (!%p288_p2), %s1635_s10, 1  ;;  %s1794_s21 = smov (!%p288_p2), 126  }
   0x6   : > { %291 = sbr.rel (%p288_p2) target bundleno = 1053 (0x41d), region = 56  ;;  %s1795_s22 = smov (!%p288_p2), 125  }
   0x7   : > { %s1796_s23 = smov (!%p288_p2), 127   ;;  %s1797_s24 = smov (!%p288_p2), 1  }
   0x8   : > { %s1798_s25 = smov (!%p288_p2), 2   ;;  %s1799_s26 = smov (!%p288_p2), 3  }
   0x9   : > { %s1801_s16 = smov (!%p288_p2), 32   ;;  %s1802_s17 = smov (!%p288_p2), 16  }
   0xa   : > { %s1804_s19 = smov (!%p288_p2), 96   ;;  %s1805_s20 = smov (!%p288_p2), 80  }
   0xb   : > { %v1793_v0 = vmov 0   ;;  %v337_v1 = vld [vmem:[%s2353_s2] sm:$0xff]  ;;  %s2362_s10 = smov (!%p323_p3, %s1635_s10), 1  ;;  %v338_v2 = vld [vmem:[%s2353_s2 + $0x8] sm:$0xff]  ;;  %vm363_vm0 = vcmask 1043456   ;;  %vm359_vm1 = vcmask 64512   ;;  %v427_v32 = vlaneseq }
   0xc   : > { %402 = vmatprep.mubr.bf16.mxu0 %v1793_v0  ;;  %1769 = vset.pattern.permute.xlu0 %v1793_v0  ;;  %s1718_s15 = sshll.u32 %s2362_s10, 3  ;;  %v1773_v7 = vld [vmem:[%s2352_s1] sm:$0xff]   ;;  %v1892_v24 = vcombine.high %v1793_v0, %v1793_v0  ;;  %v1896_v25 = vcombine.low %v1793_v0, %v1793_v0  ;;  %vm1462_vm14 = vcmask 130048  }
   0xd   : > { %341 = vperm.xlu0 %1769, %v337_v1   ;;  %834 = vmatprep.mubr.bf16.mxu1 %v1793_v0  ;;  %s327_s18 = scalar_lea.vmem %s2351_s0, %s1718_s15  ;;  %v437_v35 = vshrl.u32 %v427_v32, 7  ;;  %v1908_v36 = vand.u32 127, %v427_v32  ;;  %v1665_v41 = vld [vmem:[%s2358_s7 + $0x6] ss:$8 sm:$0x3]  ;;  %s1800_s15 = smov 48  }
   0xe   : > { %1770 = vset.pattern.permute.xlu1 %v1793_v0  ;;  %v334_v3 = vld [vmem:[%s327_s18] sm:$0xff]  ;;  %802 = vmatprep.subr.bf16.mxu1 %v1892_v24  ;;  %s1803_s18 = smov 112  }
   0xf   : > { %v1646_v4 = vcombine.high %v334_v3, %v334_v3  ;;  %v1645_v5 = vcombine.low %v334_v3, %v334_v3  ;;  %803 = vmatpush1.bf16.msra.mxu1 %v1896_v25  ;;  %v1912_v39 = vsub.s32 0, %v437_v35  ;;  %v1914_v40 = vsub.s32 1, %v437_v35  ;;  %v1662_v45 = vld [vmem:[%s2358_s7 + $0x5] ss:$8 sm:$0x3] }
  0x10   : > { %vm662_vm2 = vcmp.lt.s32.totalorder %v1908_v36, 125  ;;  %vm618_vm3 = vcmp.lt.s32.totalorder %v1908_v36, 126  ;;  %v1659_v54 = vld [vmem:[%s2358_s7 + $0x4] ss:$8 sm:$0x3]  ;;  %vm574_vm4 = vcmp.lt.s32.totalorder %v1908_v36, 127 }
  0x11   : > { %346 = vperm.xlu0 %1769, %v338_v2   ;;  %1647 = vmatprep.subr.msk.bf16.mxu0 %vm363_vm0, %v1646_v4  ;;  %v365_v6 = vsel %vm363_vm0, %v1645_v5, 0  ;;  %v673_v44 = vrot.slane %v1665_v41, %v1912_v39  ;;  %v677_v46 = vrot.slane %v1665_v41, %v1914_v40  ;;  %v629_v49 = vrot.slane %v1662_v45, %v1912_v39  ;;  %v1651_v35 = vld [vmem:[%s2358_s7 + $0x1] ss:$8 sm:$0x3] }
  0x12   : > { %385 = vmatpush1.bf16.msra.mxu0 %v365_v6  ;;  %v633_v53 = vrot.slane %v1662_v45, %v1914_v40  ;;  %v585_v62 = vrot.slane %v1659_v54, %v1912_v39  ;;  %v589_v5 = vrot.slane %v1659_v54, %v1914_v40  ;;  %vm516_vm5 = vcmp.lt.s32.totalorder %v1908_v36, 1 }
  0x13   : > { %887 = vmatprep.subr.bf16.mxu0 %v1892_v24  ;;  %vm472_vm6 = vcmp.lt.s32.totalorder %v1908_v36, 2  ;;  %v487_v45 = vrot.slane %v1651_v35, %v1914_v40  ;;  %vm429_vm7 = vcmp.lt.s32.totalorder %v1908_v36, 3  ;;  %vm938_vm8 = vcmp.lt.s32.totalorder %v1908_v36, 32 }
  0x14   : > { %vm853_vm9 = vcmp.lt.s32.totalorder %v1908_v36, 48  ;;  %vm1024_vm10 = vcmp.lt.s32.totalorder %v1908_v36, 16  ;;  %vm1166_vm11 = vcmp.lt.s32.totalorder %v1908_v36, 112  ;;  %vm1252_vm12 = vcmp.lt.s32.totalorder %v1908_v36, 96 }
  0x15   : > { %1648 = vmatmul.mubr.msk.bf16.vlgmr.msra.gmra.mxu0 %vm359_vm1, %v1773_v7  ;;  %vm1338_vm13 = vcmp.lt.s32.totalorder %v1908_v36, 80 }
  0x16   : > { %919 = vmatprep.mubr.bf16.mxu0 %v1793_v0  ;;  %888 = vmatpush1.bf16.msra.mxu0 %v1896_v25 }
  0x88   : > { %v342_v8 = vpop.permute.xlu0 %341 }
  0x8c   : > { %v347_v13 = vpop.permute.xlu0 %346 }
  0xd5   : > { %v404_v9 = vpop.f32.mrf.mxu0 }
  0xd6   : > { %v405_v10 = vadd.f32 %v404_v9, %v342_v8 }
  0xd7   : > { %v406_v11 = vpop.f32.mrf.mxu0 }
  0xd8   : > { %v413_v12 = vmax.f32 %v405_v10, 0.0  ;;  %v407_v15 = vadd.f32 %v406_v11, %v342_v8 }
  0xd9   : > { %v408_v14 = vpop.f32.mrf.mxu0 }
  0xda   : > { %v409_v16 = vadd.f32 %v408_v14, %v347_v13  ;;  %610 = vrot.lane.b32.xlu0 %v413_v12, %s1794_s21  ;;  %654 = vrot.lane.b32.xlu1 %v413_v12, %s1795_s22  ;;  %v414_v20 = vmax.f32 %v407_v15, 0.0 }
  0xdb   : > { %v410_v17 = vpop.f32.mrf.mxu0 }
  0xdc   : > { %v415_v18 = vmax.f32 %v409_v16, 0.0  ;;  %v411_v19 = vadd.f32 %v410_v17, %v347_v13 }
  0xde   : > { %v416_v21 = vmax.f32 %v411_v19, 0.0  ;;  %566 = vrot.lane.b32.xlu0 %v413_v12, %s1796_s23  ;;  %656 = vrot.lane.b32.xlu1 %v415_v18, %s1795_s22  ;;  %v1885_v22 = vpack.c.bf16 %v415_v18, %v413_v12 }
  0xe0   : > { %v1887_v23 = vpack.c.bf16 %v416_v21, %v414_v20 }
  0xe2   : > { %508 = vrot.lane.b32.xlu0 %v413_v12, %s1797_s24  ;;  %612 = vrot.lane.b32.xlu1 %v415_v18, %s1794_s21 }
  0xe6   : > { %464 = vrot.lane.b32.xlu0 %v413_v12, %s1798_s25  ;;  %568 = vrot.lane.b32.xlu1 %v415_v18, %s1796_s23 }
  0xea   : > { %658 = vrot.lane.b32.xlu0 %v414_v20, %s1795_s22  ;;  %510 = vrot.lane.b32.xlu1 %v415_v18, %s1797_s24 }
  0xee   : > { %614 = vrot.lane.b32.xlu0 %v414_v20, %s1794_s21  ;;  %466 = vrot.lane.b32.xlu1 %v415_v18, %s1798_s25 }
  0xf2   : > { %570 = vrot.lane.b32.xlu0 %v414_v20, %s1796_s23  ;;  %660 = vrot.lane.b32.xlu1 %v416_v21, %s1795_s22 }
  0xf6   : > { %419 = vrot.lane.b32.xlu0 %v413_v12, %s1799_s26  ;;  %616 = vrot.lane.b32.xlu1 %v416_v21, %s1794_s21 }
  0xfa   : > { %512 = vrot.lane.b32.xlu0 %v414_v20, %s1797_s24  ;;  %572 = vrot.lane.b32.xlu1 %v416_v21, %s1796_s23  ;;  %s1719_s23 = sshll.u32 %s2362_s10, 7 }
  0xfe   : > { %468 = vrot.lane.b32.xlu0 %v414_v20, %s1798_s25  ;;  %421 = vrot.lane.b32.xlu1 %v415_v18, %s1799_s26 }
 0x102   : > { %423 = vrot.lane.b32.xlu0 %v414_v20, %s1799_s26  ;;  %514 = vrot.lane.b32.xlu1 %v416_v21, %s1797_s24 }
 0x106   : > { %470 = vrot.lane.b32.xlu1 %v416_v21, %s1798_s25 }
 0x10a   : > { %425 = vrot.lane.b32.xlu1 %v416_v21, %s1799_s26  ;;  %v1654_v21 = vld [vmem:[%s2358_s7 + $0x2] ss:$8 sm:$0x3]  ;;  %s2330_s26 = scalar_lea.vmem %s2360_s9, %s1719_s23 }
 0x10b   : > { %v527_v32 = vrot.slane %v1654_v21, %v1912_v39 }
 0x14c   : > { %v611_v26 = vpop.permute.xlu0 %610  ;;  %v655_v27 = vpop.permute.xlu1 %654 }
 0x150   : > { %v567_v28 = vpop.permute.xlu0 %566  ;;  %v657_v29 = vpop.permute.xlu1 %656 }
 0x154   : > { %v1904_v30 = vpop.permute.xlu0 %508  ;;  %v613_v31 = vpop.permute.xlu1 %612 }
 0x158   : > { %v1906_v33 = vpop.permute.xlu0 %464  ;;  %v569_v34 = vpop.permute.xlu1 %568 }
 0x15c   : > { %v659_v37 = vpop.permute.xlu0 %658  ;;  %v1910_v38 = vpop.permute.xlu1 %510 }
 0x15d   : > { %v663_v47 = vsel %vm662_vm2, %v655_v27, %v659_v37  ;;  %v665_v48 = vsel %vm662_vm2, %v659_v37, %v655_v27 }
 0x15e   : > { %v680_v52 = vmul.f32 %v673_v44, %v663_v47  ;;  %v681_v57 = vmul.f32 %v677_v46, %v665_v48 }
 0x160   : > { %v615_v42 = vpop.permute.xlu0 %614  ;;  %v1920_v43 = vpop.permute.xlu1 %466 }
 0x161   : > { %v619_v58 = vsel %vm618_vm3, %v611_v26, %v615_v42  ;;  %v621_v61 = vsel %vm618_vm3, %v615_v42, %v611_v26 }
 0x162   : > { %v636_v4 = vmul.f32 %v629_v49, %v619_v58  ;;  %v637_v8 = vmul.f32 %v633_v53, %v621_v61 }
 0x164   : > { %v571_v50 = vpop.permute.xlu0 %570  ;;  %v661_v51 = vpop.permute.xlu1 %660 }
 0x165   : > { %v664_v55 = vsel %vm662_vm2, %v657_v29, %v661_v51  ;;  %v666_v56 = vsel %vm662_vm2, %v661_v51, %v657_v29  ;;  %v575_v11 = vsel %vm574_vm4, %v567_v28, %v571_v50  ;;  %v577_v12 = vsel %vm574_vm4, %v571_v50, %v567_v28 }
 0x166   : > { %v682_v59 = vmul.f32 %v673_v44, %v664_v55  ;;  %v683_v60 = vmul.f32 %v677_v46, %v666_v56  ;;  %v592_v19 = vmul.f32 %v585_v62, %v575_v11  ;;  %v593_v20 = vmul.f32 %v589_v5, %v577_v12 }
 0x167   : > { %v483_v44 = vrot.slane %v1651_v35, %v1912_v39 }
 0x168   : > { %v1947_v63 = vpack.c.bf16 %v682_v59, %v680_v52  ;;  %v1949_v1 = vpack.c.bf16 %v683_v60, %v681_v57  ;;  %v1951_v2 = vpop.permute.xlu0 %419  ;;  %v617_v3 = vpop.permute.xlu1 %616 }
 0x169   : > { %v620_v6 = vsel %vm618_vm3, %v613_v31, %v617_v3  ;;  %v622_v7 = vsel %vm618_vm3, %v617_v3, %v613_v31 }
 0x16a   : > { %v638_v9 = vmul.f32 %v629_v49, %v620_v6  ;;  %v639_v10 = vmul.f32 %v633_v53, %v622_v7  ;;  %804 = vmatprep.subr.bf16.mxu1 %v1949_v1  ;;  %889 = vmatprep.subr.bf16.mxu0 %v1949_v1 }
 0x16b   : > { %805 = vmatpush1.bf16.msra.mxu1 %v1947_v63  ;;  %890 = vmatpush1.bf16.msra.mxu0 %v1947_v63 }
 0x16c   : > { %v1966_v13 = vpack.c.bf16 %v638_v9, %v636_v4  ;;  %v1968_v14 = vpack.c.bf16 %v639_v10, %v637_v8  ;;  %v513_v15 = vpop.permute.xlu0 %512  ;;  %v573_v16 = vpop.permute.xlu1 %572 }
 0x16d   : > { %v576_v17 = vsel %vm574_vm4, %v569_v34, %v573_v16  ;;  %v578_v18 = vsel %vm574_vm4, %v573_v16, %v569_v34  ;;  %v531_v34 = vrot.slane %v1654_v21, %v1914_v40  ;;  %v517_v41 = vsel %vm516_vm5, %v1904_v30, %v513_v15  ;;  %v1777_v21 = vld [vmem:[%s2354_s3 + $0x18] sm:$0xff]  }
 0x16e   : > { %v594_v26 = vmul.f32 %v585_v62, %v576_v17  ;;  %v595_v27 = vmul.f32 %v589_v5, %v578_v18  ;;  %806 = vmatprep.subr.bf16.mxu1 %v1968_v14  ;;  %891 = vmatprep.subr.bf16.mxu0 %v1968_v14  ;;  %v519_v42 = vsel %vm516_vm5, %v513_v15, %v1904_v30  ;;  %v434_v30 = vld [vmem:[%s2358_s7] ss:$8 sm:$0x3] }
 0x16f   : > { %807 = vmatpush1.bf16.msra.mxu1 %v1966_v13  ;;  %892 = vmatpush1.bf16.msra.mxu0 %v1966_v13  ;;  %v534_v47 = vmul.f32 %v527_v32, %v519_v42  ;;  %v535_v48 = vmul.f32 %v531_v34, %v517_v41  ;;  %v439_v56 = vrot.slane %v434_v30, %v1912_v39  ;;  %v1774_v18 = vld [vmem:[%s2354_s3] sm:$0xff]  }
 0x170   : > { %v1981_v28 = vpack.c.bf16 %v594_v26, %v592_v19  ;;  %v1983_v29 = vpack.c.bf16 %v595_v27, %v593_v20  ;;  %v422_v31 = vpop.permute.xlu1 %421  ;;  %v469_v37 = vpop.permute.xlu0 %468  ;;  %v443_v57 = vrot.slane %v434_v30, %v1914_v40  ;;  %v1775_v19 = vld [vmem:[%s2354_s3 + $0x8] sm:$0xff]   ;;  %v1776_v20 = vld [vmem:[%s2354_s3 + $0x10] sm:$0xff]   ;;  %v1778_v26 = vld [vmem:[%s2354_s3 + $0x20] sm:$0xff]  }
 0x171   : > { %v473_v51 = vsel %vm472_vm6, %v1906_v33, %v469_v37  ;;  %v475_v52 = vsel %vm472_vm6, %v469_v37, %v1906_v33  ;;  %v1779_v27 = vld [vmem:[%s2354_s3 + $0x28] sm:$0xff]  }
 0x172   : > { %808 = vmatprep.subr.bf16.mxu1 %v1983_v29  ;;  %893 = vmatprep.subr.bf16.mxu0 %v1983_v29  ;;  %v490_v60 = vmul.f32 %v483_v44, %v475_v52  ;;  %v491_v33 = vmul.f32 %v487_v45, %v473_v51 }
 0x173   : > { %809 = vmatpush1.bf16.msra.mxu1 %v1981_v28  ;;  %894 = vmatpush1.bf16.msra.mxu0 %v1981_v28 }
 0x174   : > { %810 = vmatprep.subr.bf16.mxu1 %v1887_v23  ;;  %v515_v46 = vpop.permute.xlu1 %514  ;;  %895 = vmatprep.subr.bf16.mxu0 %v1887_v23  ;;  %v424_v55 = vpop.permute.xlu0 %423 }
 0x175   : > { %v518_v49 = vsel %vm516_vm5, %v1910_v38, %v515_v46  ;;  %v520_v50 = vsel %vm516_vm5, %v515_v46, %v1910_v38  ;;  %v432_v3 = vsel %vm429_vm7, %v424_v55, %v1951_v2  ;;  %v430_v6 = vsel %vm429_vm7, %v1951_v2, %v424_v55 }
 0x176   : > { %v536_v53 = vmul.f32 %v527_v32, %v520_v50  ;;  %v537_v54 = vmul.f32 %v531_v34, %v518_v49  ;;  %v446_v9 = vmul.f32 %v439_v56, %v432_v3  ;;  %v447_v12 = vmul.f32 %v443_v57, %v430_v6 }
 0x177   : > { %811 = vmatpush1.bf16.msra.mxu1 %v1885_v22  ;;  %896 = vmatpush1.bf16.msra.mxu0 %v1885_v22 }
 0x178   : > { %v2025_v38 = vpack.c.bf16 %v536_v53, %v534_v47  ;;  %v2027_v58 = vpack.c.bf16 %v537_v54, %v535_v48  ;;  %v471_v59 = vpop.permute.xlu1 %470  ;;  %v1364_v54 = vld [vmem:[%s2355_s4] sm:$0xff] }
 0x179   : > { %v474_v61 = vsel %vm472_vm6, %v1920_v43, %v471_v59  ;;  %v476_v62 = vsel %vm472_vm6, %v471_v59, %v1920_v43  ;;  %v1398_v59 = vld [vmem:[%s2357_s6 + $0x20] sm:$0xff] }
 0x17a   : > { %v492_v4 = vmul.f32 %v483_v44, %v476_v62  ;;  %v493_v5 = vmul.f32 %v487_v45, %v474_v61  ;;  %812 = vmatprep.subr.bf16.mxu1 %v2027_v58  ;;  %897 = vmatprep.subr.bf16.mxu0 %v2027_v58  ;;  %v1399_v61 = vld [vmem:[%s2357_s6 + $0x28] sm:$0xff]  ;;  %v1401_v62 = vld [vmem:[%s2357_s6 + $0x38] sm:$0xff] }
 0x17b   : > { %813 = vmatpush1.bf16.msra.mxu1 %v2025_v38  ;;  %898 = vmatpush1.bf16.msra.mxu0 %v2025_v38 }
 0x17c   : > { %v2045_v7 = vpack.c.bf16 %v492_v4, %v490_v60  ;;  %v2047_v8 = vpack.c.bf16 %v493_v5, %v491_v33  ;;  %v426_v43 = vpop.permute.xlu1 %425  ;;  %v1397_v60 = vld [vmem:[%s2357_s6 + $0x18] sm:$0xff]  ;;  %v1400_v33 = vld [vmem:[%s2357_s6 + $0x30] sm:$0xff] }
 0x17d   : > { %v431_v10 = vsel %vm429_vm7, %v422_v31, %v426_v43  ;;  %v433_v11 = vsel %vm429_vm7, %v426_v43, %v422_v31 }
 0x17e   : > { %v448_v15 = vmul.f32 %v439_v56, %v433_v11  ;;  %v449_v16 = vmul.f32 %v443_v57, %v431_v10  ;;  %814 = vmatprep.subr.bf16.mxu1 %v2047_v8  ;;  %899 = vmatprep.subr.bf16.mxu0 %v2047_v8  ;;  %v1394_v56 = vld [vmem:[%s2357_s6] sm:$0xff]  ;;  %v1365_v57 = vld [vmem:[%s2355_s4 + $0x8] sm:$0xff] }
 0x17f   : > { %815 = vmatpush1.bf16.msra.mxu1 %v2045_v7  ;;  %900 = vmatpush1.bf16.msra.mxu0 %v2045_v7 }
 0x180   : > { %v2057_v2 = vpack.c.bf16 %v448_v15, %v446_v9  ;;  %v2059_v17 = vpack.c.bf16 %v449_v16, %v447_v12 }
 0x182   : > { %816 = vmatprep.subr.bf16.mxu1 %v2059_v17  ;;  %901 = vmatprep.subr.bf16.mxu0 %v2059_v17 }
 0x183   : > { %817 = vmatpush1.bf16.msra.mxu1 %v2057_v2  ;;  %902 = vmatpush1.bf16.msra.mxu0 %v2057_v2 }
 0x184   : > { %973 = vmatprep.subr.bf16.mxu1 %v1892_v24  ;;  %1059 = vmatprep.subr.bf16.mxu0 %v1892_v24 }
 0x186   : > { %835 = vmatmul.mubr.bf16.vlgmr.msra.gmra.mxu1 %v1774_v18  ;;  %920 = vmatmul.mubr.bf16.vlgmr.msra.gmra.mxu0 %v1775_v19  ;;  %v858_v19 = vld [vmem:[%s2359_s8] ss:$8 sm:$0x3] }
 0x187   : > { %974 = vmatpush1.bf16.msra.mxu1 %v1896_v25  ;;  %1060 = vmatpush1.bf16.msra.mxu0 %v1896_v25 }
 0x188   : > { %975 = vmatprep.subr.bf16.mxu1 %v1949_v1  ;;  %1061 = vmatprep.subr.bf16.mxu0 %v1949_v1 }
 0x189   : > { %1005 = vmatprep.mubr.bf16.mxu1 %v1793_v0  ;;  %1091 = vmatprep.mubr.bf16.mxu0 %v1793_v0 }
 0x18b   : > { %976 = vmatpush1.bf16.msra.mxu1 %v1947_v63  ;;  %1062 = vmatpush1.bf16.msra.mxu0 %v1947_v63 }
 0x18c   : > { %977 = vmatprep.subr.bf16.mxu1 %v1968_v14  ;;  %1063 = vmatprep.subr.bf16.mxu0 %v1968_v14 }
 0x18f   : > { %978 = vmatpush1.bf16.msra.mxu1 %v1966_v13  ;;  %1064 = vmatpush1.bf16.msra.mxu0 %v1966_v13 }
 0x190   : > { %979 = vmatprep.subr.bf16.mxu1 %v1983_v29  ;;  %1065 = vmatprep.subr.bf16.mxu0 %v1983_v29 }
 0x193   : > { %980 = vmatpush1.bf16.msra.mxu1 %v1981_v28  ;;  %1066 = vmatpush1.bf16.msra.mxu0 %v1981_v28 }
 0x194   : > { %981 = vmatprep.subr.bf16.mxu1 %v1887_v23  ;;  %1067 = vmatprep.subr.bf16.mxu0 %v1887_v23 }
 0x197   : > { %982 = vmatpush1.bf16.msra.mxu1 %v1885_v22  ;;  %1068 = vmatpush1.bf16.msra.mxu0 %v1885_v22 }
 0x198   : > { %983 = vmatprep.subr.bf16.mxu1 %v2027_v58  ;;  %1069 = vmatprep.subr.bf16.mxu0 %v2027_v58 }
 0x19b   : > { %984 = vmatpush1.bf16.msra.mxu1 %v2025_v38  ;;  %1070 = vmatpush1.bf16.msra.mxu0 %v2025_v38 }
 0x19c   : > { %985 = vmatprep.subr.bf16.mxu1 %v2047_v8  ;;  %1071 = vmatprep.subr.bf16.mxu0 %v2047_v8 }
 0x19f   : > { %986 = vmatpush1.bf16.msra.mxu1 %v2045_v7  ;;  %1072 = vmatpush1.bf16.msra.mxu0 %v2045_v7 }
 0x1a0   : > { %987 = vmatprep.subr.bf16.mxu1 %v2059_v17  ;;  %1073 = vmatprep.subr.bf16.mxu0 %v2059_v17 }
 0x1a3   : > { %988 = vmatpush1.bf16.msra.mxu1 %v2057_v2  ;;  %1074 = vmatpush1.bf16.msra.mxu0 %v2057_v2 }
 0x1a4   : > { %1115 = vmatprep.subr.bf16.mxu1 %v1892_v24  ;;  %1201 = vmatprep.subr.bf16.mxu0 %v1892_v24 }
 0x1a6   : > { %1006 = vmatmul.mubr.bf16.vlgmr.msra.gmra.mxu1 %v1776_v20  ;;  %1092 = vmatmul.mubr.bf16.vlgmr.msra.gmra.mxu0 %v1777_v21  ;;  %v1688_v21 = vld [vmem:[%s2359_s8 + $0x1] ss:$8 sm:$0x3] }
 0x1a7   : > { %1116 = vmatpush1.bf16.msra.mxu1 %v1896_v25  ;;  %1202 = vmatpush1.bf16.msra.mxu0 %v1896_v25 }
 0x1a8   : > { %1117 = vmatprep.subr.bf16.mxu1 %v1949_v1  ;;  %1203 = vmatprep.subr.bf16.mxu0 %v1949_v1 }
 0x1a9   : > { %1147 = vmatprep.mubr.bf16.mxu1 %v1793_v0  ;;  %1233 = vmatprep.mubr.bf16.mxu0 %v1793_v0 }
 0x1ab   : > { %1118 = vmatpush1.bf16.msra.mxu1 %v1947_v63  ;;  %1204 = vmatpush1.bf16.msra.mxu0 %v1947_v63 }
 0x1ac   : > { %1119 = vmatprep.subr.bf16.mxu1 %v1968_v14  ;;  %1205 = vmatprep.subr.bf16.mxu0 %v1968_v14 }
 0x1af   : > { %1120 = vmatpush1.bf16.msra.mxu1 %v1966_v13  ;;  %1206 = vmatpush1.bf16.msra.mxu0 %v1966_v13 }
 0x1b0   : > { %1121 = vmatprep.subr.bf16.mxu1 %v1983_v29  ;;  %1207 = vmatprep.subr.bf16.mxu0 %v1983_v29 }
 0x1b3   : > { %1122 = vmatpush1.bf16.msra.mxu1 %v1981_v28  ;;  %1208 = vmatpush1.bf16.msra.mxu0 %v1981_v28 }
 0x1b4   : > { %1123 = vmatprep.subr.bf16.mxu1 %v1887_v23  ;;  %1209 = vmatprep.subr.bf16.mxu0 %v1887_v23 }
 0x1b7   : > { %1124 = vmatpush1.bf16.msra.mxu1 %v1885_v22  ;;  %1210 = vmatpush1.bf16.msra.mxu0 %v1885_v22 }
 0x1b8   : > { %1125 = vmatprep.subr.bf16.mxu1 %v2027_v58  ;;  %1211 = vmatprep.subr.bf16.mxu0 %v2027_v58 }
 0x1bb   : > { %1126 = vmatpush1.bf16.msra.mxu1 %v2025_v38  ;;  %1212 = vmatpush1.bf16.msra.mxu0 %v2025_v38 }
 0x1bc   : > { %1127 = vmatprep.subr.bf16.mxu1 %v2047_v8  ;;  %1213 = vmatprep.subr.bf16.mxu0 %v2047_v8 }
 0x1bf   : > { %1128 = vmatpush1.bf16.msra.mxu1 %v2045_v7  ;;  %1214 = vmatpush1.bf16.msra.mxu0 %v2045_v7 }
 0x1c0   : > { %1129 = vmatprep.subr.bf16.mxu1 %v2059_v17  ;;  %1215 = vmatprep.subr.bf16.mxu0 %v2059_v17 }
 0x1c3   : > { %1130 = vmatpush1.bf16.msra.mxu1 %v2057_v2  ;;  %1216 = vmatpush1.bf16.msra.mxu0 %v2057_v2 }
 0x1c4   : > { %1287 = vmatprep.subr.bf16.mxu1 %v1892_v24  ;;  %v1780_v24 = vld [vmem:[%s2354_s3 + $0x30] sm:$0xff]  }
 0x1c6   : > { %1148 = vmatmul.mubr.bf16.vlgmr.msra.gmra.mxu1 %v1778_v26  ;;  %1234 = vmatmul.mubr.bf16.vlgmr.msra.gmra.mxu0 %v1779_v27  ;;  %v1692_v26 = vld [vmem:[%s2359_s8 + $0x2] ss:$8 sm:$0x3] }
 0x1c7   : > { %1288 = vmatpush1.bf16.msra.mxu1 %v1896_v25  ;;  %1319 = vmatprep.mubr.bf16.mxu1 %v1793_v0 }
 0x1c8   : > { %1289 = vmatprep.subr.bf16.mxu1 %v1949_v1  ;;  %1507 = vmatprep.mubr.bf16.mxu0 %v1793_v0 }
 0x1cb   : > { %1290 = vmatpush1.bf16.msra.mxu1 %v1947_v63 }
 0x1cc   : > { %1291 = vmatprep.subr.bf16.mxu1 %v1968_v14 }
 0x1cf   : > { %1292 = vmatpush1.bf16.msra.mxu1 %v1966_v13 }
 0x1d0   : > { %1293 = vmatprep.subr.bf16.mxu1 %v1983_v29 }
 0x1d3   : > { %1294 = vmatpush1.bf16.msra.mxu1 %v1981_v28 }
 0x1d4   : > { %1295 = vmatprep.subr.bf16.mxu1 %v1887_v23 }
 0x1d7   : > { %1296 = vmatpush1.bf16.msra.mxu1 %v1885_v22 }
 0x1d8   : > { %1297 = vmatprep.subr.bf16.mxu1 %v2027_v58  ;;  %v1395_v58 = vld [vmem:[%s2357_s6 + $0x8] sm:$0xff] }
 0x1db   : > { %1298 = vmatpush1.bf16.msra.mxu1 %v2025_v38  ;;  %v1396_v38 = vld [vmem:[%s2357_s6 + $0x10] sm:$0xff] }
 0x1dc   : > { %1299 = vmatprep.subr.bf16.mxu1 %v2047_v8 }
 0x1df   : > { %1300 = vmatpush1.bf16.msra.mxu1 %v2045_v7 }
 0x1e0   : > { %1301 = vmatprep.subr.bf16.mxu1 %v2059_v17 }
 0x1e3   : > { %1302 = vmatpush1.bf16.msra.mxu1 %v2057_v2 }
 0x1e6   : > { %1320 = vmatmul.mubr.bf16.vlgmr.msra.gmra.mxu1 %v1780_v24  ;;  %v863_v24 = vrot.slane %v858_v19, %v1912_v39 }
 0x246   : > { %v836_v23 = vpop.f32.mrf.mxu1  ;;  %v921_v22 = vpop.f32.mrf.mxu0 }
 0x247   : > { %845 = vrot.lane.b32.xlu0 %v836_v23, %s1800_s15  ;;  %v1699_v23 = vld [vmem:[%s2359_s8 + $0x4] ss:$8 sm:$0x3] }
 0x248   : > { %v838_v25 = vpop.f32.mrf.mxu1  ;;  %v923_v63 = vpop.f32.mrf.mxu0 }
 0x24a   : > { %v840_v1 = vpop.f32.mrf.mxu1  ;;  %v925_v13 = vpop.f32.mrf.mxu0 }
 0x24b   : > { %930 = vrot.lane.b32.xlu0 %v921_v22, %s1801_s16  ;;  %847 = vrot.lane.b32.xlu1 %v840_v1, %s1800_s15  ;;  %v867_v22 = vrot.slane %v858_v19, %v1914_v40 }
 0x24c   : > { %v842_v14 = vpop.f32.mrf.mxu1  ;;  %v927_v28 = vpop.f32.mrf.mxu0 }
 0x24f   : > { %849 = vrot.lane.b32.xlu0 %v838_v25, %s1800_s15  ;;  %932 = vrot.lane.b32.xlu1 %v925_v13, %s1801_s16  ;;  %v949_v25 = vrot.slane %v1688_v21, %v1912_v39 }
 0x253   : > { %934 = vrot.lane.b32.xlu0 %v923_v63, %s1801_s16  ;;  %851 = vrot.lane.b32.xlu1 %v842_v14, %s1800_s15  ;;  %v953_v63 = vrot.slane %v1688_v21, %v1914_v40  ;;  %v1035_v14 = vrot.slane %v1692_v26, %v1912_v39 }
 0x257   : > { %936 = vrot.lane.b32.xlu1 %v927_v28, %s1801_s16  ;;  %v1039_v28 = vrot.slane %v1692_v26, %v1914_v40 }
 0x266   : > { %v1007_v29 = vpop.f32.mrf.mxu1  ;;  %v2173_v35 = vpop.f32.mrf.mxu0 }
 0x267   : > { %1016 = vrot.lane.b32.xlu0 %v1007_v29, %s1802_s17 }
 0x268   : > { %v1009_v31 = vpop.f32.mrf.mxu1  ;;  %v2175_v37 = vpop.f32.mrf.mxu0 }
 0x26a   : > { %v1011_v32 = vpop.f32.mrf.mxu1  ;;  %v2177_v41 = vpop.f32.mrf.mxu0 }
 0x26b   : > { %1020 = vrot.lane.b32.xlu0 %v1009_v31, %s1802_s17  ;;  %1018 = vrot.lane.b32.xlu1 %v1011_v32, %s1802_s17  ;;  %v1177_v32 = vrot.slane %v1699_v23, %v1912_v39 }
 0x26c   : > { %v1013_v34 = vpop.f32.mrf.mxu1  ;;  %v2179_v42 = vpop.f32.mrf.mxu0 }
 0x26f   : > { %1022 = vrot.lane.b32.xlu1 %v1013_v34, %s1802_s17 }
 0x286   : > { %v1149_v44 = vpop.f32.mrf.mxu1  ;;  %v1235_v45 = vpop.f32.mrf.mxu0 }
 0x287   : > { %1158 = vrot.lane.b32.xlu0 %v1149_v44, %s1803_s18 }
 0x288   : > { %v1151_v46 = vpop.f32.mrf.mxu1  ;;  %v1237_v47 = vpop.f32.mrf.mxu0 }
 0x28a   : > { %v1153_v48 = vpop.f32.mrf.mxu1  ;;  %v1239_v30 = vpop.f32.mrf.mxu0 }
 0x28b   : > { %1244 = vrot.lane.b32.xlu0 %v1235_v45, %s1804_s19  ;;  %1160 = vrot.lane.b32.xlu1 %v1153_v48, %s1803_s18 }
 0x28c   : > { %v1155_v49 = vpop.f32.mrf.mxu1  ;;  %v1241_v50 = vpop.f32.mrf.mxu0 }
 0x28f   : > { %1162 = vrot.lane.b32.xlu0 %v1151_v46, %s1803_s18  ;;  %1246 = vrot.lane.b32.xlu1 %v1239_v30, %s1804_s19 }
 0x293   : > { %1248 = vrot.lane.b32.xlu0 %v1237_v47, %s1804_s19  ;;  %1164 = vrot.lane.b32.xlu1 %v1155_v49, %s1803_s18 }
 0x297   : > { %1250 = vrot.lane.b32.xlu1 %v1241_v50, %s1804_s19 }
 0x2a6   : > { %v1321_v51 = vpop.f32.mrf.mxu1 }
 0x2a7   : > { %1330 = vrot.lane.b32.xlu0 %v1321_v51, %s1805_s20 }
 0x2a8   : > { %v1323_v52 = vpop.f32.mrf.mxu1 }
 0x2aa   : > { %v1325_v53 = vpop.f32.mrf.mxu1 }
 0x2ab   : > { %1334 = vrot.lane.b32.xlu0 %v1323_v52, %s1805_s20  ;;  %1332 = vrot.lane.b32.xlu1 %v1325_v53, %s1805_s20 }
 0x2ac   : > { %v1327_v55 = vpop.f32.mrf.mxu1 }
 0x2af   : > { %1368 = vperm.xlu0 %1769, %v1364_v54   ;;  %1336 = vrot.lane.b32.xlu1 %v1327_v55, %s1805_s20 }
 0x2b3   : > { %1404 = vperm.xlu0 %1769, %v1394_v56   ;;  %1373 = vperm.xlu1 %1770, %v1365_v57  }
 0x2b7   : > { %1414 = vperm.xlu0 %1769, %v1396_v38   ;;  %1409 = vperm.xlu1 %1770, %v1395_v58  }
 0x2b9   : > { %v846_v3 = vpop.permute.xlu0 %845 }
 0x2bb   : > { %1424 = vperm.xlu0 %1769, %v1398_v59   ;;  %1419 = vperm.xlu1 %1770, %v1397_v60   ;;  %v1703_v59 = vld [vmem:[%s2359_s8 + $0x5] ss:$8 sm:$0x3] }
 0x2bd   : > { %v848_v4 = vpop.permute.xlu1 %847  ;;  %v931_v5 = vpop.permute.xlu0 %930 }
 0x2bf   : > { %1434 = vperm.xlu0 %1769, %v1400_v33   ;;  %1429 = vperm.xlu1 %1770, %v1399_v61  }
 0x2c1   : > { %v933_v6 = vpop.permute.xlu1 %932  ;;  %v850_v7 = vpop.permute.xlu0 %849 }
 0x2c2   : > { %v854_v44 = vsel %vm853_vm9, %v846_v3, %v850_v7  ;;  %v856_v45 = vsel %vm853_vm9, %v850_v7, %v846_v3 }
 0x2c3   : > { %1439 = vperm.xlu1 %1770, %v1401_v62   ;;  %v870_v56 = vmul.f32 %v863_v24, %v856_v45  ;;  %v871_v57 = vmul.f32 %v867_v22, %v854_v44  ;;  %v1181_v62 = vrot.slane %v1699_v23, %v1914_v40 }
 0x2c5   : > { %v852_v8 = vpop.permute.xlu1 %851  ;;  %v935_v43 = vpop.permute.xlu0 %934 }
 0x2c6   : > { %v939_v1 = vsel %vm938_vm8, %v931_v5, %v935_v43  ;;  %v941_v13 = vsel %vm938_vm8, %v935_v43, %v931_v5  ;;  %v855_v49 = vsel %vm853_vm9, %v848_v4, %v852_v8  ;;  %v857_v50 = vsel %vm853_vm9, %v852_v8, %v848_v4 }
 0x2c7   : > { %v956_v48 = vmul.f32 %v949_v25, %v941_v13  ;;  %v957_v30 = vmul.f32 %v953_v63, %v939_v1  ;;  %v872_v33 = vmul.f32 %v863_v24, %v857_v50  ;;  %v873_v61 = vmul.f32 %v867_v22, %v855_v49 }
 0x2c9   : > { %v937_v9 = vpop.permute.xlu1 %936  ;;  %v960_v3 = vadd.f32 %v956_v48, %v870_v56  ;;  %v961_v4 = vadd.f32 %v957_v30, %v871_v57 }
 0x2ca   : > { %v940_v29 = vsel %vm938_vm8, %v933_v6, %v937_v9  ;;  %v942_v31 = vsel %vm938_vm8, %v937_v9, %v933_v6  ;;  %v1263_v9 = vrot.slane %v1703_v59, %v1912_v39 }
 0x2cb   : > { %v958_v52 = vmul.f32 %v949_v25, %v942_v31  ;;  %v959_v53 = vmul.f32 %v953_v63, %v940_v29 }
 0x2cd   : > { %v962_v8 = vadd.f32 %v958_v52, %v872_v33  ;;  %v963_v43 = vadd.f32 %v959_v53, %v873_v61 }
 0x2d9   : > { %v1017_v10 = vpop.permute.xlu0 %1016 }
 0x2dd   : > { %v1019_v11 = vpop.permute.xlu1 %1018  ;;  %v1021_v12 = vpop.permute.xlu0 %1020 }
 0x2de   : > { %v1025_v46 = vsel %vm1024_vm10, %v1017_v10, %v1021_v12  ;;  %v1027_v47 = vsel %vm1024_vm10, %v1021_v12, %v1017_v10  ;;  %v1267_v10 = vrot.slane %v1703_v59, %v1914_v40 }
 0x2df   : > { %v1042_v38 = vmul.f32 %v1035_v14, %v1027_v47  ;;  %v1043_v58 = vmul.f32 %v1039_v28, %v1025_v46 }
 0x2e1   : > { %v1023_v15 = vpop.permute.xlu1 %1022  ;;  %v1046_v12 = vadd.f32 %v1042_v38, %v960_v3 }
 0x2e2   : > { %v1026_v54 = vsel %vm1024_vm10, %v1019_v11, %v1023_v15  ;;  %v1028_v55 = vsel %vm1024_vm10, %v1023_v15, %v1019_v11  ;;  %v1707_v11 = vld [vmem:[%s2359_s8 + $0x6] ss:$8 sm:$0x3]  ;;  %v1047_v15 = vadd.f32 %v1043_v58, %v961_v4 }
 0x2e3   : > { %v1044_v5 = vmul.f32 %v1035_v14, %v1028_v55  ;;  %v1045_v6 = vmul.f32 %v1039_v28, %v1026_v54  ;;  %v1349_v25 = vrot.slane %v1707_v11, %v1912_v39  ;;  %v1353_v63 = vrot.slane %v1707_v11, %v1914_v40  ;;  %v1783_v11 = vld [vmem:[%s2356_s5 + $0x10] sm:$0xff]  }
 0x2e4   : > { %v1103_v28 = vadd.f32 %v2175_v37, %v1047_v15 }
 0x2e5   : > { %v1048_v23 = vadd.f32 %v1044_v5, %v962_v8  ;;  %v1049_v22 = vadd.f32 %v1045_v6, %v963_v43 }
 0x2e7   : > { %v1105_v37 = vadd.f32 %v2179_v42, %v1049_v22 }
 0x2f9   : > { %v2211_v16 = vpop.permute.xlu0 %1158 }
 0x2fd   : > { %v2213_v2 = vpop.permute.xlu1 %1160  ;;  %v2215_v17 = vpop.permute.xlu0 %1244 }
 0x301   : > { %v2217_v18 = vpop.permute.xlu1 %1246  ;;  %v1163_v20 = vpop.permute.xlu0 %1162 }
 0x302   : > { %v1167_v19 = vsel %vm1166_vm11, %v2211_v16, %v1163_v20  ;;  %v1169_v21 = vsel %vm1166_vm11, %v1163_v20, %v2211_v16  ;;  %v1102_v20 = vadd.f32 %v2173_v35, %v1046_v12  ;;  %v1104_v35 = vadd.f32 %v2177_v41, %v1048_v23  ;;  %v1784_v12 = vld [vmem:[%s2356_s5 + $0x18] sm:$0xff]  }
 0x303   : > { %v1184_v13 = vmul.f32 %v1177_v32, %v1167_v19  ;;  %v1185_v14 = vmul.f32 %v1181_v62, %v1169_v21 }
 0x305   : > { %v2229_v27 = vpop.permute.xlu1 %1164  ;;  %v1249_v34 = vpop.permute.xlu0 %1248  ;;  %v1188_v46 = vadd.f32 %v1184_v13, %v1102_v20  ;;  %v1189_v47 = vadd.f32 %v1185_v14, %v1103_v28 }
 0x306   : > { %v1253_v26 = vsel %vm1252_vm12, %v2215_v17, %v1249_v34  ;;  %v1255_v24 = vsel %vm1252_vm12, %v1249_v34, %v2215_v17  ;;  %v1168_v16 = vsel %vm1166_vm11, %v2213_v2, %v2229_v27  ;;  %v1170_v17 = vsel %vm1166_vm11, %v2229_v27, %v2213_v2 }
 0x307   : > { %v1270_v39 = vmul.f32 %v1263_v9, %v1253_v26  ;;  %v1271_v29 = vmul.f32 %v1267_v10, %v1255_v24  ;;  %v1186_v27 = vmul.f32 %v1177_v32, %v1168_v16  ;;  %v1187_v45 = vmul.f32 %v1181_v62, %v1170_v17 }
 0x309   : > { %v1251_v51 = vpop.permute.xlu1 %1250  ;;  %v1274_v52 = vadd.f32 %v1270_v39, %v1188_v46  ;;  %v1275_v53 = vadd.f32 %v1271_v29, %v1189_v47  ;;  %v1190_v54 = vadd.f32 %v1186_v27, %v1104_v35  ;;  %v1191_v41 = vadd.f32 %v1187_v45, %v1105_v37 }
 0x30a   : > { %v1254_v31 = vsel %vm1252_vm12, %v2217_v18, %v1251_v51  ;;  %v1256_v34 = vsel %vm1252_vm12, %v1251_v51, %v2217_v18 }
 0x30b   : > { %v1272_v30 = vmul.f32 %v1263_v9, %v1254_v31  ;;  %v1273_v49 = vmul.f32 %v1267_v10, %v1256_v34  ;;  %v1781_v9 = vld [vmem:[%s2356_s5] sm:$0xff]   ;;  %v1782_v10 = vld [vmem:[%s2356_s5 + $0x8] sm:$0xff]  }
 0x30d   : > { %v1276_v56 = vadd.f32 %v1272_v30, %v1190_v54  ;;  %v1277_v57 = vadd.f32 %v1273_v49, %v1191_v41 }
 0x319   : > { %v1331_v60 = vpop.permute.xlu0 %1330 }
 0x31d   : > { %v1333_v7 = vpop.permute.xlu1 %1332  ;;  %v1335_v1 = vpop.permute.xlu0 %1334 }
 0x31e   : > { %v1339_v44 = vsel %vm1338_vm13, %v1331_v60, %v1335_v1  ;;  %v1341_v2 = vsel %vm1338_vm13, %v1335_v1, %v1331_v60 }
 0x31f   : > { %v1356_v50 = vmul.f32 %v1349_v25, %v1339_v44  ;;  %v1357_v51 = vmul.f32 %v1353_v63, %v1341_v2 }
 0x321   : > { %v1337_v40 = vpop.permute.xlu1 %1336  ;;  %v1360_v38 = vadd.f32 %v1356_v50, %v1274_v52  ;;  %v1361_v58 = vadd.f32 %v1357_v51, %v1275_v53 }
 0x322   : > { %v1340_v48 = vsel %vm1338_vm13, %v1333_v7, %v1337_v40  ;;  %v1342_v18 = vsel %vm1338_vm13, %v1337_v40, %v1333_v7 }
 0x323   : > { %v1358_v55 = vmul.f32 %v1349_v25, %v1340_v48  ;;  %v1359_v42 = vmul.f32 %v1353_v63, %v1342_v18 }
 0x325   : > { %v1362_v33 = vadd.f32 %v1358_v55, %v1276_v56  ;;  %v1363_v36 = vadd.f32 %v1359_v42, %v1277_v57 }
 0x32a   : > { %v1369_v32 = vpop.permute.xlu0 %1368 }
 0x32b   : > { %v1376_v59 = vadd.f32 %v1369_v32, %v1360_v38  ;;  %v1377_v60 = vadd.f32 %v1369_v32, %v1361_v58 }
 0x32d   : > { %v1380_v4 = vmax.f32 %v1376_v59, 0.0  ;;  %v1381_v5 = vmax.f32 %v1377_v60, 0.0 }
 0x32e   : > { %v1374_v61 = vpop.permute.xlu1 %1373  ;;  %v1405_v15 = vpop.permute.xlu0 %1404 }
 0x32f   : > { %v1378_v62 = vadd.f32 %v1374_v61, %v1362_v33  ;;  %v1379_v3 = vadd.f32 %v1374_v61, %v1363_v36 }
 0x331   : > { %v1382_v6 = vmax.f32 %v1378_v62, 0.0  ;;  %v1383_v7 = vmax.f32 %v1379_v3, 0.0 }
 0x332   : > { %v1410_v23 = vpop.permute.xlu1 %1409  ;;  %v1415_v16 = vpop.permute.xlu0 %1414 }
 0x333   : > { %v1392_v8 = vpack.c.bf16 %v1382_v6, %v1380_v4  ;;  %v1393_v43 = vpack.c.bf16 %v1383_v7, %v1381_v5 }
 0x335   : > { %1489 = vmatprep.subr.bf16.mxu0 %v1393_v43 }
 0x336   : > { %1490 = vmatpush1.bf16.msra.mxu0 %v1392_v8  ;;  %v1420_v31 = vpop.permute.xlu1 %1419  ;;  %v1425_v45 = vpop.permute.xlu0 %1424 }
 0x339   : > { %1712 = vmatmul.mubr.msk.bf16.vlgmr.msra.gmra.mxu0 %vm1462_vm14, %v1781_v9 }
 0x33a   : > { %1517 = vmatprep.mubr.bf16.mxu0 %v1793_v0  ;;  %v1430_v50 = vpop.permute.xlu1 %1429  ;;  %v1435_v42 = vpop.permute.xlu0 %1434 }
 0x33e   : > { %v1440_v60 = vpop.permute.xlu1 %1439 }
 0x341   : > { %1713 = vmatmul.mubr.msk.bf16.gmra.mxu0 %vm1462_vm14, %v1782_v10 }
 0x342   : > { %1527 = vmatprep.mubr.bf16.mxu0 %v1793_v0 }
 0x349   : > { %1714 = vmatmul.mubr.msk.bf16.gmra.mxu0 %vm1462_vm14, %v1783_v11 }
 0x34a   : > { %1537 = vmatprep.mubr.bf16.mxu0 %v1793_v0 }
 0x351   : > { %1715 = vmatmul.mubr.msk.bf16.gmra.mxu0 %vm1462_vm14, %v1784_v12 }
 0x3f9   : > { %v1509_v19 = vpop.f32.mrf.mxu0 }
 0x3fa   : > { %v1510_v21 = vadd.f32 %v1509_v19, %v1405_v15 }
 0x3fb   : > { %v1511_v26 = vpop.f32.mrf.mxu0 }
 0x3fc   : > { %v1548_v24 = vmax.f32 %v1510_v21, 0.0  ;;  %v1512_v0 = vadd.f32 %v1511_v26, %v1405_v15 }
 0x3fd   : > { %v1513_v22 = vpop.f32.mrf.mxu0 }
 0x3fe   : > { %1564 = vst [vmem:[%s2330_s26] sm:$0xff] %v1548_v24  ;;  %v1549_v25 = vmax.f32 %v1512_v0, 0.0  ;;  %v1514_v63 = vadd.f32 %v1513_v22, %v1410_v23 }
 0x3ff   : > { %v1515_v1 = vpop.f32.mrf.mxu0 }
 0x400   : > { %1565 = vst [vmem:[%s2330_s26 + $0x8] sm:$0xff] %v1549_v25  ;;  %v1550_v13 = vmax.f32 %v1514_v63, 0.0  ;;  %v1516_v14 = vadd.f32 %v1515_v1, %v1410_v23 }
 0x401   : > { %v1519_v17 = vpop.f32.mrf.mxu0 }
 0x402   : > { %1566 = vst [vmem:[%s2330_s26 + $0x10] sm:$0xff] %v1550_v13  ;;  %v1551_v20 = vmax.f32 %v1516_v14, 0.0  ;;  %v1520_v28 = vadd.f32 %v1519_v17, %v1415_v16 }
 0x403   : > { %v1521_v39 = vpop.f32.mrf.mxu0 }
 0x404   : > { %1567 = vst [vmem:[%s2330_s26 + $0x18] sm:$0xff] %v1551_v20  ;;  %v1552_v29 = vmax.f32 %v1520_v28, 0.0  ;;  %v1522_v40 = vadd.f32 %v1521_v39, %v1415_v16 }
 0x405   : > { %v1523_v34 = vpop.f32.mrf.mxu0 }
 0x406   : > { %1568 = vst [vmem:[%s2330_s26 + $0x20] sm:$0xff] %v1552_v29  ;;  %v1553_v44 = vmax.f32 %v1522_v40, 0.0  ;;  %v1524_v2 = vadd.f32 %v1523_v34, %v1420_v31 }
 0x407   : > { %v1525_v35 = vpop.f32.mrf.mxu0 }
 0x408   : > { %1569 = vst [vmem:[%s2330_s26 + $0x28] sm:$0xff] %v1553_v44  ;;  %v1554_v37 = vmax.f32 %v1524_v2, 0.0  ;;  %v1526_v27 = vadd.f32 %v1525_v35, %v1420_v31 }
 0x409   : > { %v1529_v46 = vpop.f32.mrf.mxu0 }
 0x40a   : > { %1570 = vst [vmem:[%s2330_s26 + $0x30] sm:$0xff] %v1554_v37  ;;  %v1555_v47 = vmax.f32 %v1526_v27, 0.0  ;;  %v1530_v48 = vadd.f32 %v1529_v46, %v1425_v45 }
 0x40b   : > { %v1531_v18 = vpop.f32.mrf.mxu0 }
 0x40c   : > { %1571 = vst [vmem:[%s2330_s26 + $0x38] sm:$0xff] %v1555_v47  ;;  %v1556_v30 = vmax.f32 %v1530_v48, 0.0  ;;  %v1532_v49 = vadd.f32 %v1531_v18, %v1425_v45 }
 0x40d   : > { %v1533_v51 = vpop.f32.mrf.mxu0 }
 0x40e   : > { %1572 = vst [vmem:[%s2330_s26 + $0x40] sm:$0xff] %v1556_v30  ;;  %v1557_v52 = vmax.f32 %v1532_v49, 0.0  ;;  %v1534_v53 = vadd.f32 %v1533_v51, %v1430_v50 }
 0x40f   : > { %v1535_v54 = vpop.f32.mrf.mxu0 }
 0x410   : > { %1573 = vst [vmem:[%s2330_s26 + $0x48] sm:$0xff] %v1557_v52  ;;  %v1558_v41 = vmax.f32 %v1534_v53, 0.0  ;;  %v1536_v55 = vadd.f32 %v1535_v54, %v1430_v50 }
 0x411   : > { %v1539_v32 = vpop.f32.mrf.mxu0 }
 0x412   : > { %1574 = vst [vmem:[%s2330_s26 + $0x50] sm:$0xff] %v1558_v41  ;;  %v1559_v56 = vmax.f32 %v1536_v55, 0.0  ;;  %v1540_v57 = vadd.f32 %v1539_v32, %v1435_v42 }
 0x413   : > { %v1541_v38 = vpop.f32.mrf.mxu0 }
 0x414   : > { %1575 = vst [vmem:[%s2330_s26 + $0x58] sm:$0xff] %v1559_v56  ;;  %v1560_v58 = vmax.f32 %v1540_v57, 0.0  ;;  %v1542_v59 = vadd.f32 %v1541_v38, %v1435_v42 }
 0x415   : > { %v1543_v33 = vpop.f32.mrf.mxu0 }
 0x416   : > { %1576 = vst [vmem:[%s2330_s26 + $0x60] sm:$0xff] %v1560_v58  ;;  %v1561_v36 = vmax.f32 %v1542_v59, 0.0  ;;  %v1544_v61 = vadd.f32 %v1543_v33, %v1440_v60 }
 0x417   : > { %v1545_v62 = vpop.f32.mrf.mxu0 }
 0x418   : > { %1577 = vst [vmem:[%s2330_s26 + $0x68] sm:$0xff] %v1561_v36  ;;  %v1562_v3 = vmax.f32 %v1544_v61, 0.0  ;;  %v1546_v4 = vadd.f32 %v1545_v62, %v1440_v60 }
 0x41a   : > { %1578 = vst [vmem:[%s2330_s26 + $0x70] sm:$0xff] %v1562_v3  ;;  %v1563_v5 = vmax.f32 %v1546_v4, 0.0 }
 0x41c   : > { %1579 = vst [vmem:[%s2330_s26 + $0x78] sm:$0xff] %v1563_v5 }
 0x41d PF: > { %s19_s30 = sadd.s32 1, %s1791_s30  }
 0x41e   : > { %p16_p4 = scmp.ge.s32.totalorder %s19_s30, 4  }
 0x420   :  { %18 = sbr.rel (!%p16_p4) target bundleno = 1 (0x1), region = 102 }

</bundles_post_ra>
